<compile_context>
chip_gen: v6e
topology: v6e:2x2x1
jax: 0.10.0
libtpu: 0.0.40
codegen_flags: <defaults>
</compile_context>

<pallas_src>
import functools

import jax
import jax.numpy as jnp
from jax.experimental import pallas as pl
from jax.experimental.pallas import tpu as pltpu


def _cdiv(a, b):
    return (a + b - 1) // b


def _round_up(a, b):
    return _cdiv(a, b) * b


# --------------------------------------------------------------------------
# Fused attention kernel
# grid = (N, S_pad // TS); spatial is the last ("arbitrary") reduction axis,
# N is "parallel".  Per-tile refs:
#   l_ref    (1, Cl, TS) l.dtype   g_ref    (1, A, TS) bf16
#   wl_ref   (A, Cl)     bf16      phiw_ref (1, A)     f32
#   phib_ref (1, 1)      f32  (SMEM scalar)
# outputs:
#   c_ref    (1, 1, TS)  f32  (lane-dense attention logits, per-tile store)
#   out_ref  (1, 1, Cl)  f32  (resident across the spatial axis, final store)
# scratch:  acc (1, Cl) f32, m (1,1) f32, d (1,1) f32
# --------------------------------------------------------------------------
def _fused_attn_kernel(l_ref, g_ref, wl_ref, phiw_ref, phib_ref,
                       c_ref, out_ref,
                       acc_ref, m_ref, d_ref,
                       *, normalize_attn, inv_s, s_true, needs_mask):
    s_idx = pl.program_id(1)
    n_s = pl.num_programs(1)
    ts = c_ref.shape[2]

    @pl.when(s_idx == 0)
    def _init():
        acc_ref[...] = jnp.zeros_like(acc_ref)
        if normalize_attn:
            m_ref[...] = jnp.full_like(m_ref, -jnp.inf)
            d_ref[...] = jnp.zeros_like(d_ref)

    # Cast the l tile to bf16 in VMEM (inputs may arrive f32 or bf16).
    l_bf = l_ref[0].astype(jnp.bfloat16)                       # (Cl, TS) bf16
    # l_ = W_l(l): bf16 x bf16 MXU matmul, f32 accumulation.
    l_proj = jnp.dot(wl_ref[...], l_bf,
                     preferred_element_type=jnp.float32)       # (A, TS) f32
    h = jnp.maximum(l_proj + g_ref[0].astype(jnp.float32), 0.0)
    # c = phi(h) + b : attention logits for this spatial tile (lane-dense).
    c = jnp.dot(phiw_ref[...], h,
                preferred_element_type=jnp.float32)            # (1, TS) f32
    c = c + phib_ref[0, 0]
    c_ref[0] = c                                               # pad region sliced off outside

    if needs_mask:
        col = s_idx * ts + jax.lax.broadcasted_iota(jnp.int32, (1, ts), 1)
        valid = col < s_true
    else:
        valid = None

    if normalize_attn:
        # Online (flash-style) softmax over the tiled spatial axis.
        c_m = jnp.where(valid, c, -1e30) if needs_mask else c
        tile_max = jnp.max(c_m, axis=1, keepdims=True)         # (1, 1)
        m_new = jnp.maximum(m_ref[...], tile_max)
        scale = jnp.exp(m_ref[...] - m_new)                    # (1, 1)
        p = jnp.exp(c_m - m_new)                               # (1, TS)
        if needs_mask:
            p = jnp.where(valid, p, 0.0)
        d_ref[...] = d_ref[...] * scale + jnp.sum(p, axis=1, keepdims=True)
        part = jax.lax.dot_general(                            # (1, Cl) on MXU, bf16 in / f32 acc
            p.astype(jnp.bfloat16), l_bf, (((1,), (1,)), ((), ())),
            preferred_element_type=jnp.float32)
        acc_ref[...] = acc_ref[...] * scale + part
        m_ref[...] = m_new
    else:
        # Padded l columns are zero, so no masking is needed here.
        a = jax.nn.sigmoid(c)                                  # (1, TS)
        part = jax.lax.dot_general(                            # (1, Cl) on MXU
            a.astype(jnp.bfloat16), l_bf, (((1,), (1,)), ((), ())),
            preferred_element_type=jnp.float32)
        acc_ref[...] = acc_ref[...] + part

    @pl.when(s_idx == n_s - 1)
    def _finalize():
        if normalize_attn:
            out_ref[0] = (acc_ref[...] / d_ref[...]).astype(out_ref.dtype)
        else:
            out_ref[0] = (acc_ref[...] * inv_s).astype(out_ref.dtype)


# --------------------------------------------------------------------------
# Glue: W_g 1x1 projection + bilinear upsample of the small gating map
# (matches F.interpolate(mode='bilinear', align_corners=False) for integer
# scale factors).  Left to XLA; the upsampled map is written once as bf16.
# TODO(synk): fuse the W_g projection + separable bilinear upsample into the
# attention kernel (needs row-structured spatial tiles) to kill this HBM
# round trip entirely.
# --------------------------------------------------------------------------
def _bilinear_upsample_nchw(x, factor):
    def axis_interp(x, axis, in_size):
        out_size = in_size * factor
        src = (jnp.arange(out_size, dtype=jnp.float32) + 0.5) / factor - 0.5
        src = jnp.maximum(src, 0.0)
        i0 = jnp.floor(src).astype(jnp.int32)
        i1 = jnp.minimum(i0 + 1, in_size - 1)
        w1 = src - i0.astype(jnp.float32)
        w0 = 1.0 - w1
        x0 = jnp.take(x, i0, axis=axis)
        x1 = jnp.take(x, i1, axis=axis)
        shape = [1] * x.ndim
        shape[axis] = out_size
        return x0 * w0.reshape(shape) + x1 * w1.reshape(shape)

    _, _, Hin, Win = x.shape
    x = axis_interp(x, 2, Hin)
    x = axis_interp(x, 3, Win)
    return x


def _project_and_upsample_g(g_nchw, w_g, up_factor):
    # W_g 1x1 conv == per-pixel channel matmul on the tiny gating map.
    g_proj = jnp.einsum("nchw,ca->nahw",
                        g_nchw.astype(jnp.float32), w_g.astype(jnp.float32))
    if up_factor > 1:
        g_proj = _bilinear_upsample_nchw(g_proj, up_factor)
    return g_proj                                              # (N, A, H, W) f32


# --------------------------------------------------------------------------
# Per-generation VMEM budget and spatial-tile selection.
# --------------------------------------------------------------------------
def _vmem_capacity_bytes():
    try:
        return int(pltpu.get_tpu_info().vmem_capacity_bytes)
    except Exception:
        return 64 * 1024 * 1024      # conservative fallback (v7x-sized VMEM)


def _choose_spatial_tile(S, Cl, A, l_itemsize, ts_budget_bytes,
                         min_tile=512, max_tile=32768):
    """Pick (TS multiple of 128, n_tiles) so that per-tile VMEM stays within
    budget while each grid step streams enough bytes to hide per-step overhead."""
    # Bytes of VMEM per lane of TS:
    #   l blocks  : 2 buffers * Cl * itemsize
    #   g blocks  : 2 buffers * A * 2 (bf16)
    #   c out     : 2 buffers * 4 (f32)
    #   f32 temps : l_proj + h + softmax rows (~3*A*4) + slack
    per_lane = 2 * Cl * l_itemsize + 4 * A + 8 + 12 * A + 64
    ts_cap = ts_budget_bytes // per_lane
    ts_cap = max(min_tile, min(max_tile, ts_cap))
    ts_cap = max(128, (ts_cap // 128) * 128)
    if S <= ts_cap:
        return _round_up(S, 128), 1
    n_tiles = _cdiv(S, ts_cap)
    ts = _round_up(_cdiv(S, n_tiles), 128)
    return ts, n_tiles


# --------------------------------------------------------------------------
# Module wrapper
# --------------------------------------------------------------------------
def grid_attention_block(l_nchw, g_nchw, params, *, up_factor,
                         normalize_attn=False):
    N, Cl, H, W = l_nchw.shape
    S = H * W
    A = params["W_l"].shape[1]

    # g_up = upsample(W_g(g)) — XLA glue; materialized once in bf16.
    g_up = _project_and_upsample_g(g_nchw, params["W_g"], up_factor)
    g_cs = g_up.reshape(N, A, S).astype(jnp.bfloat16)          # (N, A, S)

    # NCHW is already (C, S) once spatial is flattened: long S axis on lanes.
    # Keep l's dtype (no extra HBM convert pass); kernel casts to bf16 in VMEM.
    l_cs = l_nchw.reshape(N, Cl, S)                            # (N, Cl, S)

    wl = jnp.transpose(params["W_l"]).astype(jnp.bfloat16)     # (A, Cl)
    phi_w = jnp.transpose(params["phi_w"]).astype(jnp.float32)  # (1, A)
    phi_b = params["phi_b"].reshape(1, 1).astype(jnp.float32)   # (1, 1)

    vmem_cap = _vmem_capacity_bytes()
    vmem_limit = int(vmem_cap * 0.80)          # v6e/v5e ~102 MiB, v7x ~51 MiB
    ts_budget = int(vmem_cap * 0.50)
    TS, n_s_tiles = _choose_spatial_tile(S, Cl, A, l_cs.dtype.itemsize, ts_budget)
    S_pad = TS * n_s_tiles

    if S_pad != S:
        pad = S_pad - S
        l_cs = jnp.pad(l_cs, ((0, 0), (0, 0), (0, pad)))
        g_cs = jnp.pad(g_cs, ((0, 0), (0, 0), (0, pad)))

    kernel = functools.partial(_fused_attn_kernel,
                               normalize_attn=normalize_attn,
                               inv_s=1.0 / S,
                               s_true=S,
                               needs_mask=(S_pad != S))

    # TODO(synk): when N == 1 on a 2-TensorCore chip (v7x), additionally split
    # the spatial reduction across cores (per-core partial acc/m/d + combine)
    # so the second core does not idle.
    c_flat, out = pl.pallas_call(
        kernel,
        out_shape=(
            jax.ShapeDtypeStruct((N, 1, S_pad), jnp.float32),  # lane-dense c
            jax.ShapeDtypeStruct((N, 1, Cl), jnp.float32),
        ),
        grid_spec=pltpu.PrefetchScalarGridSpec(
            num_scalar_prefetch=0,
            grid=(N, n_s_tiles),
            in_specs=[
                pl.BlockSpec((1, Cl, TS), lambda n, s: (n, 0, s)),
                pl.BlockSpec((1, A, TS), lambda n, s: (n, 0, s)),
                pl.BlockSpec((A, Cl), lambda n, s: (0, 0)),
                pl.BlockSpec((1, A), lambda n, s: (0, 0)),
                pl.BlockSpec(memory_space=pltpu.MemorySpace.SMEM),
            ],
            out_specs=[
                pl.BlockSpec((1, 1, TS), lambda n, s: (n, 0, s)),
                pl.BlockSpec((1, 1, Cl), lambda n, s: (n, 0, 0)),
            ],
            scratch_shapes=[
                pltpu.VMEM((1, Cl), jnp.float32),              # out accumulator
                pltpu.VMEM((1, 1), jnp.float32),               # running max
                pltpu.VMEM((1, 1), jnp.float32),               # running denom
            ],
        ),
        compiler_params=pltpu.CompilerParams(
            dimension_semantics=("parallel", "arbitrary"),
            vmem_limit_bytes=vmem_limit,
        ),
    )(l_cs, g_cs, wl, phi_w, phi_b)

    c_nchw = c_flat[:, :, :S].reshape(N, 1, H, W)
    output = out.reshape(N, Cl)
    return c_nchw, output


def init_params(key, in_features_l, in_features_g, attn_features):
    k1, k2, k3, k4 = jax.random.split(key, 4)
    # 1x1 conv weights stored as (Cin, Cout) matrices (== conv weight[:, :, 0, 0].T)
    return {
        "W_l": 0.1 * jax.random.normal(k1, (in_features_l, attn_features), jnp.float32),
        "W_g": 0.1 * jax.random.normal(k2, (in_features_g, attn_features), jnp.float32),
        "phi_w": 0.1 * jax.random.normal(k3, (attn_features, 1), jnp.float32),
        "phi_b": 0.1 * jax.random.normal(k4, (1, 1), jnp.float32),
    }


# --------------------------------------------------------------------------
# Pure-jnp reference (mirrors the kernel's bf16 input rounding so the check
# isolates kernel math from quantization).
# --------------------------------------------------------------------------
def _reference(l_nchw, g_nchw, params, *, up_factor, normalize_attn):
    N, Cl, H, W = l_nchw.shape
    S = H * W
    A = params["W_l"].shape[1]
    g_up = _project_and_upsample_g(g_nchw, params["W_g"], up_factor)
    g_up = g_up.astype(jnp.bfloat16).astype(jnp.float32).reshape(N, A, S)
    l_cs = l_nchw.reshape(N, Cl, S).astype(jnp.bfloat16).astype(jnp.float32)
    wl = params["W_l"].astype(jnp.bfloat16).astype(jnp.float32)   # (Cl, A)

    l_proj = jnp.einsum("ncs,ca->nas", l_cs, wl)
    h = jnp.maximum(l_proj + g_up, 0.0)
    c = jnp.einsum("nas,a->ns", h, params["phi_w"][:, 0]) + params["phi_b"][0, 0]
    if normalize_attn:
        a = jax.nn.softmax(c, axis=1)
        out = jnp.einsum("ns,ncs->nc", a, l_cs)
    else:
        a = jax.nn.sigmoid(c)
        out = jnp.einsum("ns,ncs->nc", a, l_cs) / S
    return c.reshape(N, 1, H, W), out


if __name__ == "__main__":
    key = jax.random.PRNGKey(0)

    N, Cl, Cg, A = 2, 8, 8, 16
    up_factor = 2

    # Case 1: S a multiple of 128 (no padding). Case 2: odd spatial size
    # (exercises the zero-pad + logit-mask path).
    for (H, W) in ((32, 32), (30, 30)):
        kl, kg, kp, key = jax.random.split(key, 4)
        Hg, Wg = H // up_factor, W // up_factor

        l = jax.random.normal(kl, (N, Cl, H, W), jnp.float32)
        g = jax.random.normal(kg, (N, Cg, Hg, Wg), jnp.float32)
        params = init_params(kp, Cl, Cg, A)

        for normalize_attn in (False, True):
            c, out = grid_attention_block(l, g, params, up_factor=up_factor,
                                          normalize_attn=normalize_attn)
            jax.block_until_ready((c, out))
            assert c.shape == (N, 1, H, W), c.shape
            assert out.shape == (N, Cl), out.shape

            c_ref, out_ref = _reference(l, g, params, up_factor=up_factor,
                                        normalize_attn=normalize_attn)
            assert bool(jnp.allclose(c, c_ref, atol=2e-3, rtol=2e-3)), (
                "c mismatch", (H, W), normalize_attn)
            assert bool(jnp.allclose(out, out_ref, atol=2e-3, rtol=2e-3)), (
                "output mismatch", (H, W), normalize_attn)

    print("KERNEL_OK")
</pallas_src>

<mosaic_0001>
module attributes {stable_mosaic.version = 11 : i64} {
  func.func @_fused_attn_kernel(%arg0: i32, %arg1: i32, %arg2: memref<1x8x1024xf32, #tpu.memory_space<vmem>>, %arg3: memref<1x16x1024xbf16, #tpu.memory_space<vmem>>, %arg4: memref<16x8xbf16, #tpu.memory_space<vmem>>, %arg5: memref<1x16xf32, #tpu.memory_space<vmem>>, %arg6: memref<1x1xf32, #tpu.memory_space<smem>>, %arg7: memref<1x1x1024xf32, #tpu.memory_space<vmem>>, %arg8: memref<1x1x8xf32, #tpu.memory_space<vmem>>, %arg9: memref<1x8xf32, #tpu.memory_space<vmem>>, %arg10: memref<1x1xf32, #tpu.memory_space<vmem>>, %arg11: memref<1x1xf32, #tpu.memory_space<vmem>>) attributes {dimension_semantics = [#tpu.dimension_semantics<parallel>, #tpu.dimension_semantics<arbitrary>], iteration_bounds = array<i64: 2, 1>, scalar_prefetch = 0 : i64, scratch_operands = 3 : i64, tpu.core_type = #tpu.core_type<tc>, window_params = [{transform_indices = @transform_0, window_bounds = array<i64: 1, 8, 1024>}, {transform_indices = @transform_1, window_bounds = array<i64: 1, 16, 1024>}, {pipeline_mode = #tpu.pipeline_mode<synchronous>, transform_indices = @transform_2, window_bounds = array<i64: 16, 8>}, {pipeline_mode = #tpu.pipeline_mode<synchronous>, transform_indices = @transform_3, window_bounds = array<i64: 1, 16>}, {transform_indices = @transform_4, window_bounds = array<i64: 1, 1>}, {transform_indices = @transform_5, window_bounds = array<i64: 1, 1, 1024>}, {transform_indices = @transform_6, window_bounds = array<i64: 1, 1, 8>}]} {
    %c0_i32 = arith.constant 0 : i32
    %0 = arith.cmpi eq, %arg1, %c0_i32 : i32
    %1 = arith.extui %0 : i1 to i32
    %c0_i32_0 = arith.constant 0 : i32
    %2 = arith.cmpi ne, %1, %c0_i32_0 : i32
    scf.if %2 {
      %cst_25 = arith.constant 0.000000e+00 : f32
      %35 = vector.broadcast %cst_25 : f32 to vector<1x8xf32>
      %c0_26 = arith.constant 0 : index
      %c0_27 = arith.constant 0 : index
      %36 = vector.load %arg9[%c0_26, %c0_27] : memref<1x8xf32, #tpu.memory_space<vmem>>, vector<1x8xf32>
      tpu.vector_store %arg9[%c0_26, %c0_27], %35 {strides = array<i32>} : memref<1x8xf32, #tpu.memory_space<vmem>>, vector<1x8xf32>,
    } else {
    }
    %c0 = arith.constant 0 : index
    %c0_1 = arith.constant 0 : index
    %c0_2 = arith.constant 0 : index
    %3 = vector.load %arg2[%c0, %c0_1, %c0_2] : memref<1x8x1024xf32, #tpu.memory_space<vmem>>, vector<1x8x1024xf32>
    %4 = vector.shape_cast %3 : vector<1x8x1024xf32> to vector<8x1024xf32>
    %5 = arith.truncf %4 : vector<8x1024xf32> to vector<8x1024xbf16>
    %c0_3 = arith.constant 0 : index
    %c0_4 = arith.constant 0 : index
    %6 = vector.load %arg4[%c0_3, %c0_4] : memref<16x8xbf16, #tpu.memory_space<vmem>>, vector<16x8xbf16>
    %cst = arith.constant dense<0.000000e+00> : vector<16x1024xf32>
    %7 = tpu.matmul %6, %5, %cst {dimension_numbers = #tpu.dot_dimension_numbers<[1], [0], [0], [1], [0, 0, 1, 1], [], []>} : vector<16x8xbf16>, vector<8x1024xbf16>, vector<16x1024xf32> -> vector<16x1024xf32>
    %c0_5 = arith.constant 0 : index
    %c0_6 = arith.constant 0 : index
    %c0_7 = arith.constant 0 : index
    %8 = vector.load %arg3[%c0_5, %c0_6, %c0_7] : memref<1x16x1024xbf16, #tpu.memory_space<vmem>>, vector<1x16x1024xbf16>
    %9 = vector.shape_cast %8 : vector<1x16x1024xbf16> to vector<16x1024xbf16>
    %10 = arith.extf %9 : vector<16x1024xbf16> to vector<16x1024xf32>
    %11 = arith.addf %7, %10 : vector<16x1024xf32>
    %cst_8 = arith.constant 0.000000e+00 : f32
    %12 = vector.broadcast %cst_8 : f32 to vector<16x1024xf32>
    %13 = arith.maximumf %11, %12 : vector<16x1024xf32>
    %c0_9 = arith.constant 0 : index
    %c0_10 = arith.constant 0 : index
    %14 = vector.load %arg5[%c0_9, %c0_10] : memref<1x16xf32, #tpu.memory_space<vmem>>, vector<1x16xf32>
    %cst_11 = arith.constant dense<0.000000e+00> : vector<1x1024xf32>
    %15 = tpu.matmul %14, %13, %cst_11 {dimension_numbers = #tpu.dot_dimension_numbers<[1], [0], [0], [1], [0, 0, 1, 1], [], []>} : vector<1x16xf32>, vector<16x1024xf32>, vector<1x1024xf32> -> vector<1x1024xf32>
    %c0_12 = arith.constant 0 : index
    %c0_13 = arith.constant 0 : index
    %16 = memref.load %arg6[%c0_12, %c0_13] : memref<1x1xf32, #tpu.memory_space<smem>>
    %17 = vector.broadcast %16 : f32 to vector<1x1024xf32>
    %18 = arith.addf %15, %17 : vector<1x1024xf32>
    %c0_14 = arith.constant 0 : index
    %c0_15 = arith.constant 0 : index
    %c0_16 = arith.constant 0 : index
    %19 = vector.load %arg7[%c0_14, %c0_15, %c0_16] : memref<1x1x1024xf32, #tpu.memory_space<vmem>>, vector<1x1x1024xf32>
    %20 = vector.shape_cast %19 : vector<1x1x1024xf32> to vector<1x1024xf32>
    %21 = vector.shape_cast %18 : vector<1x1024xf32> to vector<1x1x1024xf32>
    tpu.vector_store %arg7[%c0_14, %c0_15, %c0_16], %21 {strides = array<i32>} : memref<1x1x1024xf32, #tpu.memory_space<vmem>>, vector<1x1x1024xf32>,
    %22 = arith.negf %18 : vector<1x1024xf32>
    %23 = math.exp %22 : vector<1x1024xf32>
    %cst_17 = arith.constant 1.000000e+00 : f32
    %24 = vector.broadcast %cst_17 : f32 to vector<1x1024xf32>
    %25 = arith.addf %24, %23 : vector<1x1024xf32>
    %26 = arith.divf %24, %25 : vector<1x1024xf32>
    %27 = arith.truncf %26 : vector<1x1024xf32> to vector<1x1024xbf16>
    %cst_18 = arith.constant dense<0.000000e+00> : vector<1x8xf32>
    %28 = tpu.matmul %27, %5, %cst_18 {dimension_numbers = #tpu.dot_dimension_numbers<[1], [1], [0], [0], [0, 0, 1, 0], [], []>} : vector<1x1024xbf16>, vector<8x1024xbf16>, vector<1x8xf32> -> vector<1x8xf32>
    %c0_19 = arith.constant 0 : index
    %c0_20 = arith.constant 0 : index
    %29 = vector.load %arg9[%c0_19, %c0_20] : memref<1x8xf32, #tpu.memory_space<vmem>>, vector<1x8xf32>
    %30 = arith.addf %29, %28 : vector<1x8xf32>
    %c0_21 = arith.constant 0 : index
    %c0_22 = arith.constant 0 : index
    %31 = vector.load %arg9[%c0_21, %c0_22] : memref<1x8xf32, #tpu.memory_space<vmem>>, vector<1x8xf32>
    tpu.vector_store %arg9[%c0_21, %c0_22], %30 {strides = array<i32>} : memref<1x8xf32, #tpu.memory_space<vmem>>, vector<1x8xf32>,
    %c0_i32_23 = arith.constant 0 : i32
    %32 = arith.cmpi eq, %arg1, %c0_i32_23 : i32
    %33 = arith.extui %32 : i1 to i32
    %c0_i32_24 = arith.constant 0 : i32
    %34 = arith.cmpi ne, %33, %c0_i32_24 : i32
    scf.if %34 {
      %c0_25 = arith.constant 0 : index
      %c0_26 = arith.constant 0 : index
      %35 = vector.load %arg9[%c0_25, %c0_26] : memref<1x8xf32, #tpu.memory_space<vmem>>, vector<1x8xf32>
      %cst_27 = arith.constant 9.765625E-4 : f32
      %36 = vector.broadcast %cst_27 : f32 to vector<1x8xf32>
      %37 = arith.mulf %35, %36 : vector<1x8xf32>
      %c0_28 = arith.constant 0 : index
      %c0_29 = arith.constant 0 : index
      %c0_30 = arith.constant 0 : index
      %38 = vector.load %arg8[%c0_28, %c0_29, %c0_30] : memref<1x1x8xf32, #tpu.memory_space<vmem>>, vector<1x1x8xf32>
      %39 = vector.shape_cast %38 : vector<1x1x8xf32> to vector<1x8xf32>
      %40 = vector.shape_cast %37 : vector<1x8xf32> to vector<1x1x8xf32>
      tpu.vector_store %arg8[%c0_28, %c0_29, %c0_30], %40 {strides = array<i32>} : memref<1x1x8xf32, #tpu.memory_space<vmem>>, vector<1x1x8xf32>,
    } else {
    }
    return
  }
  func.func @transform_0(%arg0: i32, %arg1: i32) -> (i32, i32, i32) {
    %c0_i32 = arith.constant 0 : i32
    %c0_i32_0 = arith.constant 0 : i32
    return %arg0, %c0_i32, %arg1 : i32, i32, i32
  }
  func.func @transform_1(%arg0: i32, %arg1: i32) -> (i32, i32, i32) {
    %c0_i32 = arith.constant 0 : i32
    %c0_i32_0 = arith.constant 0 : i32
    return %arg0, %c0_i32, %arg1 : i32, i32, i32
  }
  func.func @transform_2(%arg0: i32, %arg1: i32) -> (i32, i32) {
    %c0_i32 = arith.constant 0 : i32
    %c0_i32_0 = arith.constant 0 : i32
    %c0_i32_1 = arith.constant 0 : i32
    return %c0_i32, %c0_i32_0 : i32, i32
  }
  func.func @transform_3(%arg0: i32, %arg1: i32) -> (i32, i32) {
    %c0_i32 = arith.constant 0 : i32
    %c0_i32_0 = arith.constant 0 : i32
    %c0_i32_1 = arith.constant 0 : i32
    return %c0_i32, %c0_i32_0 : i32, i32
  }
  func.func @transform_4(%arg0: i32, %arg1: i32) -> (i32, i32) {
    %c0_i32 = arith.constant 0 : i32
    %c0_i32_0 = arith.constant 0 : i32
    %c0_i32_1 = arith.constant 0 : i32
    return %c0_i32, %c0_i32_0 : i32, i32
  }
  func.func @transform_5(%arg0: i32, %arg1: i32) -> (i32, i32, i32) {
    %c0_i32 = arith.constant 0 : i32
    %c0_i32_0 = arith.constant 0 : i32
    return %arg0, %c0_i32, %arg1 : i32, i32, i32
  }
  func.func @transform_6(%arg0: i32, %arg1: i32) -> (i32, i32, i32) {
    %c0_i32 = arith.constant 0 : i32
    %c0_i32_0 = arith.constant 0 : i32
    %c0_i32_1 = arith.constant 0 : i32
    return %arg0, %c0_i32, %c0_i32_0 : i32, i32, i32
  }
}

</mosaic_0001>

<bundles_post_ra>
// kernel: tpu_custom_call.1
= control target key start
LH: loop header
LB: loop body
LE: loop exit
PB: predicated region body
PF: predicated region fallthrough
CT: control target
= control target key end

     0   :  { %s1987_s0 = inlined_call_operand.hbm [shape: f32[2,8,1024], index: 0, kind: input, shape index: {}]   ;;  %s1988_s1 = inlined_call_operand.hbm [shape: bf16[2,16,1024], index: 1, kind: input, shape index: {}]   ;;  %s1989_s2 = inlined_call_operand.vmem [shape: bf16[16,8], index: 2, kind: input, shape index: {}]   ;;  %s1990_s3 = inlined_call_operand.vmem [shape: f32[1,16], index: 3, kind: input, shape index: {}]   ;;  %s1991_s4 = inlined_call_operand.<no memory space> [shape: f32[1,1], index: 4, kind: input, shape index: {}]   ;;  %s1992_s5 = inlined_call_operand.hbm [shape: f32[2,1,1024], index: 5, kind: output, shape index: {0}]   ;;  %s1993_s6 = inlined_call_operand.hbm [shape: f32[2,1,8], index: 6, kind: output, shape index: {1}]  }
   0x1   :  { %12 = sst [smem:[#allocation5]] %s1991_s4 }
   0x2   :  { %13 = vsyncpa [#allocation7], 0 }
   0x3   :  { %15 = vsyncpa [#allocation7 + $0x1], 0 }
   0x4   :  { %16 = vsyncpa [#allocation10], 0 }
   0x5   :  { %18 = vsyncpa [#allocation10 + $0x1], 0 }
   0x6   :  { %19 = vsyncpa [#allocation8], 0 }
   0x7   :  { %21 = vsyncpa [#allocation8 + $0x1], 0 }
   0x8   :  { %22 = vsyncpa [#allocation13], 0 }
   0x9   :  { %24 = vsyncpa [#allocation13 + $0x1], 0  ;;  %s1736_s23 = smov 0   ;;  %s1738_s24 = smov 0  }
   0xa   :  { %s1740_s25 = smov 0   ;;  %s1742_s26 = smov 0  }
   0xb   :  { %s1744_s27 = smov 0   ;;  %s1746_s28 = smov 0  }
   0xc LB: > { %s1363_s4 = sadd.s32 4294967295, %s1687_s28   ;;  %s1364_s29 = sadd.s32 4294967294, %s1687_s28   ;;  %s1687_s28 = sphi %s1746_s28, %s30_s28   ;;  %s1683_s27 = sphi %s1744_s27, %s2006_s27   ;;  %s1679_s26 = sphi %s1742_s26, %s2005_s26   ;;  %s1675_s25 = sphi %s1740_s25, %s2004_s25   ;;  %s1671_s24 = sphi %s1738_s24, %s2003_s24   ;;  %s1667_s23 = sphi %s1736_s23, %s2002_s23  }
   0xd   : > { %s42_s30 = sadd.s32 1, %s1683_s27  ;;  %s51_s7 = sadd.s32 1, %s1675_s25 }
   0xe   : > { %p44_p0 = scmp.ge.s32.totalorder %s42_s30, 2  ;;  %p58_p1 = scmp.ne.s32.totalorder %s1675_s25, %s1671_s24 }
   0xf   : > { %p59_p2 = scmp.eq.s32.totalorder %s1687_s28, 0  ;;  %p64_p3 = scmp.ne.s32.totalorder %s1671_s24, %s1667_s23 }
  0x10   : > { %s2008_s30 = smov (%p44_p0, %s42_s30), 0  ;;  %p65_p5 = scmp.eq.s32.totalorder %s1363_s4, 0 }
  0x11   : > { %p1777_p4 = por %p59_p2, %p58_p1  ;;  %s46_s9 = ssub.s32 %s1683_s27, %s2008_s30 }
  0x12   : > { %p181_p6 = scmp.eq.s32.totalorder %s1363_s4, 1  ;;  %p49_p7 = scmp.eq.s32.totalorder %s46_s9, 0 }
  0x13   : > { %p1783_p8 = por %p65_p5, %p64_p3  ;;  %p187_p10 = scmp.eq.s32.totalorder %s1364_s29, 1 }
  0x14   : > { %p1787_p9 = por %p181_p6, %p58_p1  ;;  %p1429_p13 = scmp.lt.s32.totalorder %s1687_s28, 2 }
  0x15   : > { %s1792_s12 = scalar_select %p49_p7, %s1675_s25, %s51_s7  }
  0x16   : > { %p1794_p11 = por %p187_p10, %p64_p3  ;;  %s1801_s14 = sand.u32 1, %s1675_s25  }
  0x17   : > { %s1367_s15 = sshll.u32 %s1801_s14, 6  ;;  %s1404_s16 = sshll.u32 %s1683_s27, 10 }
  0x18   : > { %s1997_s13 = scalar_select %p1794_p11, 1, 0 }
  0x19   : > { %s254_s19 = scalar_lea.hbm %s1987_s0, %s1404_s16  ;;  %s246_s20 = scalar_lea.vmem [#allocation6], %s1367_s15 }
  0x1a   : > { %s256_s21 = sshll.u32 %s246_s20, 4  ;;  %p1810_p0 = pnand %p1429_p13, %p1777_p4  ;;  %s257_s21 = int_to_ptr.vmem [resolvable:$true] %s256_s21 }
  0x1b   : > { %s1817_s7 = scalar_lea.hbm %s1988_s1, %s1404_s16  ;;  %s243_s9 = scalar_lea.sflag [#allocation7], %s1801_s14 }
  0x1c   : > { %p1519_p1 = pneg %p1810_p0  ;;  %s1530_s17 = scalar_lea.vmem %s257_s21, 1024 }
  0x1d   : > { %p1531_p2 = scmp.ne.s32.totalorder %s257_s21, %s1530_s17  ;;  %s1689_s8 = smov [#allocation6]  }
  0x1e   : > { %s1535_s18 = sshll.u32 %s1689_s8, 4  ;;  %s1536_s18 = int_to_ptr.vmem [resolvable:$false] %s1535_s18 }
  0x1f   : > { %p1533_p3 = pnand %p1531_p2, %p1519_p1  ;;  %s1537_s20 = scalar_lea.vmem %s1536_s18, 2048 }
  0x20   : > { %p1538_p4 = scmp.lt.s32.totalorder %s257_s21, %s1536_s18  ;;  %p1539_p6 = scmp.lt.s32.totalorder %s1537_s20, %s1530_s17 }
  0x21   : > { %p1534_p5 = pneg %p1533_p3 }
  0x22   : > { %p1540_p7 = por %p1539_p6, %p1538_p4 }
  0x24   : > { %p1541_p10 = pnand %p1540_p7, %p1534_p5 }
  0x26   : > { %1544 = shalt.err (!%p1541_p10)
}
  0x27   : > { %1418 = dma.hbm_to_vmem [thread:$0]  (!%p1810_p0), %s254_s19, 1024, %s257_s21, %s243_s9  }
  0x28   : > { %s267_s16 = scalar_lea.vmem [#allocation9], %s1367_s15  ;;  %p1373_p13 = scmp.ge.s32.totalorder %s1687_s28, 1 }
  0x29   : > { %s276_s4 = sshll.u32 %s267_s16, 4  ;;  %p284_p2 = scmp.lt.s32.totalorder %s1687_s28, 3  ;;  %s277_s4 = int_to_ptr.vmem [resolvable:$true] %s276_s4 }
  0x2a   : > { %s264_s17 = scalar_lea.sflag [#allocation10], %s1801_s14  ;;  %s1558_s8 = scalar_lea.vmem %s277_s4, 1024 }
  0x2b   : > { %p1829_p3 = pnand %p1373_p13, %p284_p2  ;;  %p1559_p5 = scmp.ne.s32.totalorder %s277_s4, %s1558_s8 }
  0x2c   : > { %s1690_s18 = smov [#allocation9]  }
  0x2d   : > { %p1561_p4 = pnand %p1559_p5, %p1519_p1  ;;  %s1563_s20 = sshll.u32 %s1690_s18, 4  ;;  %s1564_s20 = int_to_ptr.vmem [resolvable:$false] %s1563_s20 }
  0x2e   : > { %s1565_s19 = scalar_lea.vmem %s1564_s20, 2048  ;;  %p1566_p7 = scmp.lt.s32.totalorder %s277_s4, %s1564_s20 }
  0x2f   : > { %p1562_p6 = pneg %p1561_p4  ;;  %p1567_p10 = scmp.lt.s32.totalorder %s1565_s19, %s1558_s8 }
  0x31   : > { %p1568_p12 = por %p1567_p10, %p1566_p7 }
  0x33   : > { %p1569_p11 = pnand %p1568_p12, %p1562_p6 }
  0x35   : > { %1572 = shalt.err (!%p1569_p11)
}
  0x36   : > { %s1691_s15 = smov 512   ;;  %s1692_s21 = smov 32  }
  0x37   : > { %1421 = dma.hbm_to_vmem [thread:$0]  (!%p1810_p0), %s1817_s7, 1024, %s277_s4, %s264_s17, %s1691_s15, %s1691_s15, %s1692_s21  }
  0x38   : > { %288 = sbr.rel (%p1829_p3) target bundleno = 741 (0x2e5), region = 40  ;;  %s1843_s14 = sand.u32 (!%p1829_p3), 1, %s1671_s24  }
  0x39   : > { %s1374_s9 = sshll.u32 (!%p1829_p3), %s1843_s14, 6  ;;  %s291_s16 = scalar_lea.sflag (!%p1829_p3), [#allocation7], %s1843_s14 }
  0x3a   : > { %s294_s8 = scalar_lea.vmem (!%p1829_p3), [#allocation6], %s1374_s9 }
  0x3d   : > { %1650 = dma.done.wait (%p1783_p8), %s291_s16, 1024  }
  0x3e   : > { %1652 = vsyncadd (%p1783_p8), %s291_s16, 4294966272  ;;  %s300_s22 = scalar_lea.sflag [#allocation10], %s1843_s14  ;;  %s1852_s7 = scalar_lea.vmem [#allocation9], %s1374_s9 }
  0x3f   : > { %1654 = dma.done.wait (%p1783_p8), %s300_s22, 1024  }
  0x40   : > { %1656 = vsyncadd (%p1783_p8), %s300_s22, 4294966272  ;;  %v1693_v0 = vmov 0   ;;  %v352_v1 = vld [vmem:[%s294_s8 + $0x8] sm:$0xff]  ;;  %vm402_vm0 = vcmask 1043456   ;;  %v354_v2 = vld [vmem:[%s294_s8 + $0x18] sm:$0xff]  ;;  %vm398_vm1 = vcmask 64512  }
  0x41   : > { %459 = vmatprep.mubr.bf16.mxu0 %v1693_v0  ;;  %502 = vmatprep.mubr.bf16.mxu1 %v1693_v0  ;;  %v351_v3 = vld [vmem:[%s294_s8] sm:$0xff]  ;;  %v1858_v4 = vpack.c.bf16 %v352_v1, %v352_v1  ;;  %v1860_v5 = vpack.c.bf16 %v354_v2, %v354_v2  ;;  %v353_v7 = vld [vmem:[%s294_s8 + $0x10] sm:$0xff]  ;;  %v356_v9 = vld [vmem:[%s294_s8 + $0x28] sm:$0xff]  ;;  %v1694_v22 = vmov 0.0   ;;  %vm618_vm2 = vcmask 130048   ;;  %s616_s18 = sld [smem:[#allocation5]] }
  0x42   : > { %v1862_v6 = vpack.c.bf16 %v351_v3, %v351_v3  ;;  %v1864_v8 = vpack.c.bf16 %v353_v7, %v353_v7  ;;  %v358_v10 = vld [vmem:[%s294_s8 + $0x38] sm:$0xff]  ;;  %v1875_v13 = vpack.c.bf16 %v356_v9, %v356_v9  ;;  %v355_v15 = vld [vmem:[%s294_s8 + $0x20] sm:$0xff]  ;;  %v357_v16 = vld [vmem:[%s294_s8 + $0x30] sm:$0xff]  ;;  %s1376_s20 = sshll.u32 %s1843_s14, 3  ;;  %vm349_vm3 = vcmask 57344   ;;  %s1406_s15 = sshll.u32 %s1679_s26, 7 }
  0x43   : > { %1378 = vmatprep.subr.msk.bf16.mxu0 %vm402_vm0, %v1858_v4  ;;  %1380 = vmatprep.subr.msk.bf16.mxu1 %vm402_vm0, %v1860_v5  ;;  %v1484_v12 = vld [vmem:[%s1989_s2] sm:$0xff]   ;;  %v1877_v14 = vpack.c.bf16 %v358_v10, %v358_v10  ;;  %v1881_v18 = vpack.c.bf16 %v355_v15, %v355_v15  ;;  %v1883_v19 = vpack.c.bf16 %v357_v16, %v357_v16  ;;  %v374_v25 = vld [vmem:[%s1852_s7 + $0x28] sm:$0xff]  ;;  %v371_v43 = vld [vmem:[%s1852_s7 + $0x10] sm:$0xff]  ;;  %s1919_s19 = scalar_lea.vmem [#allocation11], %s1376_s20  ;;  %s1210_s16 = scalar_lea.hbm %s1992_s5, %s1406_s15 }
  0x44   : > { %v404_v11 = vsel %vm402_vm0, %v1862_v6, 0  ;;  %v410_v17 = vsel %vm402_vm0, %v1864_v8, 0  ;;  %v373_v23 = vld [vmem:[%s1852_s7 + $0x20] sm:$0xff]  ;;  %v370_v27 = vld [vmem:[%s1852_s7 + $0x8] sm:$0xff]  ;;  %v387_v33 = vunpack.c.l.bf16 %v374_v25  ;;  %v388_v38 = vunpack.c.h.bf16 %v374_v25  ;;  %v372_v48 = vld [vmem:[%s1852_s7 + $0x18] sm:$0xff]  ;;  %s1212_s8 = sshll.u32 %s1919_s19, 4  ;;  %s1213_s8 = int_to_ptr.vmem [resolvable:$true] %s1212_s8 }
  0x45   : > { %442 = vmatpush1.bf16.msra.mxu0 %v404_v11  ;;  %485 = vmatpush1.bf16.msra.mxu1 %v410_v17  ;;  %v416_v20 = vsel %vm402_vm0, %v1881_v18, 0  ;;  %v422_v21 = vsel %vm402_vm0, %v1883_v19, 0  ;;  %v369_v26 = vld [vmem:[%s1852_s7] sm:$0xff]  ;;  %v385_v30 = vunpack.c.l.bf16 %v373_v23  ;;  %v386_v34 = vunpack.c.h.bf16 %v373_v23  ;;  %v375_v49 = vld [vmem:[%s1852_s7 + $0x30] sm:$0xff]  ;;  %v376_v54 = vld [vmem:[%s1852_s7 + $0x38] sm:$0xff]  ;;  %s1192_s22 = scalar_lea.sflag [#allocation8], %s1843_s14 }
  0x46   : > { %1382 = vmatprep.subr.msk.bf16.mxu0 %vm402_vm0, %v1875_v13  ;;  %1384 = vmatprep.subr.msk.bf16.mxu1 %vm402_vm0, %v1877_v14  ;;  %v378_v31 = vunpack.c.h.bf16 %v369_v26  ;;  %v377_v35 = vunpack.c.l.bf16 %v369_v26  ;;  %v380_v36 = vunpack.c.h.bf16 %v370_v27  ;;  %v379_v39 = vunpack.c.l.bf16 %v370_v27  ;;  %v615_v16 = vld [vmem:[%s1990_s3] sm:$0x1]  ;;  %350 = vst.msk [vmem:[#allocation2] sm:$0x1] %vm349_vm3, %v1694_v22  ;;  %s1573_s7 = scalar_lea.vmem %s1213_s8, 128  ;;  %s1696_s10 = smov [#allocation11]  }
  0x47   : > { %v381_v57 = vunpack.c.l.bf16 %v371_v43  ;;  %v382_v59 = vunpack.c.h.bf16 %v371_v43  ;;  %v384_v63 = vunpack.c.h.bf16 %v372_v48  ;;  %v391_v7 = vunpack.c.l.bf16 %v376_v54  ;;  %p1574_p8 = scmp.ne.s32.totalorder %s1213_s8, %s1573_s7  ;;  %s1577_s4 = sshll.u32 %s1696_s10, 4  ;;  %s1578_s4 = int_to_ptr.vmem [resolvable:$false] %s1577_s4 }
  0x48   : > { %1379 = vmatmul.mubr.msk.bf16.vlgmr.msra.gmra.mxu0 %vm398_vm1, %v1484_v12  ;;  %1381 = vmatmul.mubr.msk.bf16.vlgmr.msra.gmra.mxu1 %vm398_vm1, %v1484_v12  ;;  %v390_v9 = vunpack.c.h.bf16 %v375_v49  ;;  %v392_v15 = vunpack.c.h.bf16 %v376_v54  ;;  %v1695_v43 = vmov 1966171168   ;;  %s1579_s29 = scalar_lea.vmem %s1578_s4, 256  ;;  %p1580_p0 = scmp.lt.s32.totalorder %s1213_s8, %s1578_s4 }
  0x49   : > { %528 = vmatpush1.bf16.msra.mxu0 %v416_v20  ;;  %571 = vmatpush1.bf16.msra.mxu1 %v422_v21  ;;  %v383_v20 = vunpack.c.l.bf16 %v372_v48  ;;  %p1575_p11 = pnand %p1574_p8, %p1787_p9  ;;  %p1581_p1 = scmp.lt.s32.totalorder %s1579_s29, %s1573_s7 }
  0x4a   : > { %545 = vmatprep.mubr.bf16.mxu0 %v1693_v0  ;;  %588 = vmatprep.mubr.bf16.mxu1 %v1693_v0  ;;  %v389_v0 = vunpack.c.l.bf16 %v375_v49 }
  0x4b   : > { %p1576_p12 = pneg %p1575_p11  ;;  %p1582_p13 = por %p1581_p1, %p1580_p0 }
  0x4d   : > { %p1583_p2 = pnand %p1582_p13, %p1576_p12 }
  0x50   : > { %1383 = vmatmul.mubr.msk.bf16.vlgmr.msra.gmra.mxu0 %vm398_vm1, %v1484_v12  ;;  %1385 = vmatmul.mubr.msk.bf16.vlgmr.msra.gmra.mxu1 %vm398_vm1, %v1484_v12 }
  0x51   : > { %686 = vmatprep.mubr.f32.mxu0 %v1694_v22  ;;  %757 = vmatprep.mubr.f32.mxu1 %v1694_v22 }
 0x108   : > { %v461_v24 = vpop.f32.mrf.mxu0  ;;  %v504_v28 = vpop.f32.mrf.mxu1 }
 0x109   : > { %v462_v50 = vadd.f32 %v461_v24, %v377_v35  ;;  %v505_v55 = vadd.f32 %v504_v28, %v379_v39 }
 0x10a   : > { %v463_v29 = vpop.f32.mrf.mxu0  ;;  %v506_v32 = vpop.f32.mrf.mxu1 }
 0x10b   : > { %v464_v44 = vadd.f32 %v463_v29, %v378_v31  ;;  %v507_v51 = vadd.f32 %v506_v32, %v380_v36  ;;  %v599_v10 = vmax.f32 %v462_v50, 0.0  ;;  %v601_v17 = vmax.f32 %v505_v55, 0.0 }
 0x10c   : > { %v465_v37 = vpop.f32.mrf.mxu0  ;;  %v508_v40 = vpop.f32.mrf.mxu1 }
 0x10d   : > { %v466_v41 = vadd.f32 %v465_v37, %v385_v30  ;;  %v509_v45 = vadd.f32 %v508_v40, %v387_v33  ;;  %v600_v1 = vmax.f32 %v464_v44, 0.0  ;;  %v602_v11 = vmax.f32 %v507_v51, 0.0 }
 0x10e   : > { %v467_v42 = vpop.f32.mrf.mxu0  ;;  %v510_v47 = vpop.f32.mrf.mxu1  ;;  %v919_v44 = vunpack.c.l.s4 %v1695_v43 }
 0x10f   : > { %v468_v46 = vadd.f32 %v467_v42, %v386_v34  ;;  %v511_v52 = vadd.f32 %v510_v47, %v388_v38  ;;  %v607_v60 = vmax.f32 %v466_v41, 0.0  ;;  %v609_v2 = vmax.f32 %v509_v45, 0.0 }
 0x110   : > { %v547_v53 = vpop.f32.mrf.mxu0  ;;  %v590_v58 = vpop.f32.mrf.mxu1  ;;  %v617_v41 = vstv %s616_s18  ;;  %v921_v45 = vlaneseq  ;;  %v920_v51 = vunpack.c.0.s8 %v919_v44 }
 0x111   : > { %v608_v56 = vmax.f32 %v468_v46, 0.0  ;;  %v610_v61 = vmax.f32 %v511_v52, 0.0  ;;  %v548_v29 = vadd.f32 %v547_v53, %v381_v57  ;;  %v591_v32 = vadd.f32 %v590_v58, %v383_v20 }
 0x112   : > { %v549_v62 = vpop.f32.mrf.mxu0  ;;  %v592_v3 = vpop.f32.mrf.mxu1 }
 0x113   : > { %650 = vmatprep.subr.mxu0 %v608_v56  ;;  %721 = vmatprep.subr.mxu1 %v610_v61  ;;  %v550_v25 = vadd.f32 %v549_v62, %v382_v59  ;;  %v593_v30 = vadd.f32 %v592_v3, %v384_v63  ;;  %v603_v38 = vmax.f32 %v548_v29, 0.0  ;;  %v605_v40 = vmax.f32 %v591_v32, 0.0 }
 0x114   : > { %v551_v12 = vpop.f32.mrf.mxu0  ;;  %651 = vmatpush1.msra.mxu0 %v607_v60  ;;  %v594_v21 = vpop.f32.mrf.mxu1  ;;  %722 = vmatpush1.msra.mxu1 %v609_v2 }
 0x115   : > { %652 = vmatprep.subr.mxu0 %v600_v1  ;;  %v552_v23 = vadd.f32 %v551_v12, %v389_v0  ;;  %723 = vmatprep.subr.mxu1 %v602_v11  ;;  %v595_v26 = vadd.f32 %v594_v21, %v391_v7  ;;  %v604_v36 = vmax.f32 %v550_v25, 0.0  ;;  %v606_v39 = vmax.f32 %v593_v30, 0.0 }
 0x116   : > { %v553_v24 = vpop.f32.mrf.mxu0  ;;  %653 = vmatpush1.msra.mxu0 %v599_v10  ;;  %v596_v28 = vpop.f32.mrf.mxu1  ;;  %724 = vmatpush1.msra.mxu1 %v601_v17 }
 0x117   : > { %v554_v27 = vadd.f32 %v553_v24, %v390_v9  ;;  %1386 = vmatmul.mubr.msk.f32.vlgmr.msra.gmra.mxu0 %vm618_vm2, %v615_v16  ;;  %v597_v31 = vadd.f32 %v596_v28, %v392_v15  ;;  %1387 = vmatmul.mubr.msk.f32.vlgmr.msra.gmra.mxu1 %vm618_vm2, %v615_v16  ;;  %v611_v34 = vmax.f32 %v552_v23, 0.0  ;;  %v613_v37 = vmax.f32 %v595_v26, 0.0 }
 0x118   : > { %828 = vmatprep.mubr.f32.mxu0 %v1694_v22  ;;  %899 = vmatprep.mubr.f32.mxu1 %v1694_v22 }
 0x119   : > { %v612_v33 = vmax.f32 %v554_v27, 0.0  ;;  %v614_v35 = vmax.f32 %v597_v31, 0.0 }
 0x11b   : > { %792 = vmatprep.subr.mxu0 %v612_v33  ;;  %863 = vmatprep.subr.mxu1 %v614_v35 }
 0x11c   : > { %793 = vmatpush1.msra.mxu0 %v611_v34  ;;  %864 = vmatpush1.msra.mxu1 %v613_v37 }
 0x11d   : > { %794 = vmatprep.subr.mxu0 %v604_v36  ;;  %865 = vmatprep.subr.mxu1 %v606_v39 }
 0x11e   : > { %795 = vmatpush1.msra.mxu0 %v603_v38  ;;  %866 = vmatpush1.msra.mxu1 %v605_v40 }
 0x11f   : > { %1388 = vmatmul.mubr.msk.f32.vlgmr.msra.gmra.mxu0 %vm618_vm2, %v615_v16  ;;  %1389 = vmatmul.mubr.msk.f32.vlgmr.msra.gmra.mxu1 %vm618_vm2, %v615_v16 }
 0x120   : > { %1035 = vmatprep.subr.bf16.mxu0 %v1858_v4  ;;  %1075 = vmatprep.subr.bf16.mxu1 %v1860_v5 }
 0x121   : > { %1036 = vmatpush1.bf16.xpose.msra.mxu0 %v1862_v6  ;;  %1076 = vmatpush1.bf16.xpose.msra.mxu1 %v1864_v8  ;;  %v922_v8 = vshrl.u32 %v921_v45, 7 }
 0x122   : > { %1115 = vmatprep.subr.bf16.mxu0 %v1875_v13  ;;  %1155 = vmatprep.subr.bf16.mxu1 %v1877_v14 }
 0x123   : > { %v923_v54 = vsub.s32 %v920_v51, %v922_v8 }
 0x1d7   : > { %v688_v42 = vpop.f32.mrf.mxu0  ;;  %v759_v47 = vpop.f32.mrf.mxu1 }
 0x1d8   : > { %v689_v46 = vadd.f32 %v688_v42, %v617_v41  ;;  %v760_v48 = vadd.f32 %v759_v47, %v617_v41 }
 0x1d9   : > { %v690_v4 = vpop.f32.mrf.mxu0  ;;  %v761_v50 = vpop.f32.mrf.mxu1 }
 0x1da   : > { %v1390_v49 = vmul.f32 -1.442695, %v689_v46  ;;  %v691_v5 = vadd.f32 %v690_v4, %v617_v41  ;;  %v1392_v6 = vmul.f32 -1.442695, %v760_v48  ;;  %v762_v52 = vadd.f32 %v761_v50, %v617_v41 }
 0x1dc   : > { %1485 = vpow2.f32 %v1390_v49  ;;  %v1391_v13 = vmul.f32 -1.442695, %v691_v5  ;;  %v1393_v14 = vmul.f32 -1.442695, %v762_v52  ;;  %v914_v53 = vcombine.low %v689_v46, %v691_v5 }
 0x1dd   : > { %1487 = vpow2.f32 %v1392_v6  ;;  %v915_v55 = vcombine.low %v760_v48, %v762_v52 }
 0x1de   : > { %1489 = vpow2.f32 %v1391_v13  ;;  %v924_v0 = vrot.slane %v914_v53, %v923_v54 }
 0x1df   : > { %1491 = vpow2.f32 %v1393_v14  ;;  %v830_v56 = vpop.f32.mrf.mxu0  ;;  %v901_v58 = vpop.f32.mrf.mxu1  ;;  %v931_v1 = vrot.slane %v915_v55, %v923_v54 }
 0x1e0   : > { %v831_v57 = vadd.f32 %v830_v56, %v617_v41  ;;  %v902_v59 = vadd.f32 %v901_v58, %v617_v41 }
 0x1e1   : > { %v832_v60 = vpop.f32.mrf.mxu0  ;;  %v903_v63 = vpop.f32.mrf.mxu1  ;;  %v946_v15 = vcombine.low %v924_v0, %v931_v1 }
 0x1e2   : > { %v1394_v61 = vmul.f32 -1.442695, %v831_v57  ;;  %v833_v62 = vadd.f32 %v832_v60, %v617_v41  ;;  %v1396_v2 = vmul.f32 -1.442695, %v902_v59  ;;  %v904_v3 = vadd.f32 %v903_v63, %v617_v41 }
 0x1e3   : > { %v954_v26 = vrot.slane %v946_v15, %v923_v54 }
 0x1e4   : > { %1493 = vpow2.f32 %v1394_v61  ;;  %v916_v7 = vcombine.low %v831_v57, %v833_v62  ;;  %v1395_v9 = vmul.f32 -1.442695, %v833_v62  ;;  %v917_v10 = vcombine.low %v902_v59, %v904_v3 }
 0x1e5   : > { %1495 = vpow2.f32 %v1396_v2  ;;  %v1397_v11 = vmul.f32 -1.442695, %v904_v3 }
 0x1e6   : > { %v938_v12 = vrot.slane %v916_v7, %v923_v54  ;;  %1497 = vpow2.f32 %v1395_v9  ;;  %v945_v16 = vrot.slane %v917_v10, %v923_v54 }
 0x1e7   : > { %1499 = vpow2.f32 %v1397_v11 }
 0x1e8   : > { %v947_v20 = vcombine.low %v938_v12, %v945_v16 }
 0x1e9   : > { %v1486_v17 = vpop.eup %1485 }
 0x1ea   : > { %v1488_v21 = vpop.eup %1487  ;;  %v989_v23 = vadd.f32 1.0, %v1486_v17  ;;  %v961_v27 = vrot.slane %v947_v20, %v923_v54 }
 0x1eb   : > { %v1490_v24 = vpop.eup %1489  ;;  %v991_v25 = vadd.f32 1.0, %v1488_v21 }
 0x1ec   : > { %v1492_v28 = vpop.eup %1491  ;;  %1501 = vrcp.f32 %v989_v23  ;;  %v990_v29 = vadd.f32 1.0, %v1490_v24  ;;  %v962_v31 = vcombine.low %v954_v26, %v961_v27 }
 0x1ed   : > { %1503 = vrcp.f32 %v991_v25  ;;  %v992_v30 = vadd.f32 1.0, %v1492_v28 }
 0x1ee   : > { %1505 = vrcp.f32 %v990_v29  ;;  %964 = vst [vmem:[%s1919_s19] sm:$0xff] %v962_v31 }
 0x1ef   : > { %1507 = vrcp.f32 %v992_v30 }
 0x1f1   : > { %v1494_v32 = vpop.eup %1493 }
 0x1f2   : > { %v1496_v33 = vpop.eup %1495  ;;  %v993_v34 = vadd.f32 1.0, %v1494_v32 }
 0x1f3   : > { %v1498_v35 = vpop.eup %1497  ;;  %v995_v36 = vadd.f32 1.0, %v1496_v33 }
 0x1f4   : > { %v1500_v37 = vpop.eup %1499  ;;  %1509 = vrcp.f32 %v993_v34  ;;  %v994_v38 = vadd.f32 1.0, %v1498_v35 }
 0x1f5   : > { %1511 = vrcp.f32 %v995_v36  ;;  %v996_v39 = vadd.f32 1.0, %v1500_v37 }
 0x1f6   : > { %1513 = vrcp.f32 %v994_v38 }
 0x1f7   : > { %1515 = vrcp.f32 %v996_v39 }
 0x1f9   : > { %v1502_v40 = vpop.eup %1501 }
 0x1fa   : > { %v1504_v41 = vpop.eup %1503  ;;  %v1013_v47 = vpack.c.bf16 %v1502_v40, %v1502_v40 }
 0x1fb   : > { %v1506_v42 = vpop.eup %1505  ;;  %v1015_v45 = vpack.c.bf16 %v1504_v41, %v1504_v41 }
 0x1fc   : > { %v1508_v43 = vpop.eup %1507  ;;  %v1014_v44 = vpack.c.bf16 %v1506_v42, %v1506_v42 }
 0x1fd   : > { %v1016_v46 = vpack.c.bf16 %v1508_v43, %v1508_v43 }
 0x1fe   : > { %1053 = vmatprep.mubr.bf16.mxu0 %v1014_v44 }
 0x1ff   : > { %1093 = vmatprep.mubr.bf16.mxu1 %v1016_v46  ;;  %1054 = vmatmul.mubr.bf16.vlgmr.msra.gmra.mxu0 %v1013_v47 }
 0x200   : > { %1094 = vmatmul.mubr.bf16.vlgmr.msra.gmra.mxu1 %v1015_v45  ;;  %1116 = vmatpush1.bf16.xpose.msra.mxu0 %v1881_v18 }
 0x201   : > { %v1510_v48 = vpop.eup %1509  ;;  %1156 = vmatpush1.bf16.xpose.msra.mxu1 %v1883_v19 }
 0x202   : > { %v1512_v4 = vpop.eup %1511  ;;  %v1017_v8 = vpack.c.bf16 %v1510_v48, %v1510_v48 }
 0x203   : > { %v1514_v49 = vpop.eup %1513  ;;  %v1019_v6 = vpack.c.bf16 %v1512_v4, %v1512_v4 }
 0x204   : > { %v1516_v5 = vpop.eup %1515  ;;  %v1018_v50 = vpack.c.bf16 %v1514_v49, %v1514_v49 }
 0x205   : > { %v1020_v51 = vpack.c.bf16 %v1516_v5, %v1516_v5 }
 0x206   : > { %1133 = vmatprep.mubr.bf16.mxu0 %v1018_v50 }
 0x207   : > { %1173 = vmatprep.mubr.bf16.mxu1 %v1020_v51  ;;  %1134 = vmatmul.mubr.bf16.vlgmr.msra.gmra.mxu0 %v1017_v8 }
 0x208   : > { %1174 = vmatmul.mubr.bf16.vlgmr.msra.gmra.mxu1 %v1019_v6 }
 0x209   : > { %1586 = shalt.err (!%p1583_p2)
}
 0x20a   : > { %s1587_s17 = scalar_lea.hbm %s1210_s16, 128  ;;  %s1591_s19 = scalar_lea.hbm %s1992_s5, 256 }
 0x20b   : > { %p1588_p3 = scmp.ne.s32.totalorder %s1210_s16, %s1587_s17  ;;  %p1592_p6 = scmp.lt.s32.totalorder %s1210_s16, %s1992_s5 }
 0x20c   : > { %p1593_p7 = scmp.lt.s32.totalorder %s1591_s19, %s1587_s17 }
 0x20d   : > { %p1589_p5 = pnand %p1588_p3, %p1787_p9 }
 0x20e   : > { %p1594_p10 = por %p1593_p7, %p1592_p6 }
 0x20f   : > { %p1590_p4 = pneg %p1589_p5 }
 0x211   : > { %p1595_p8 = pnand %p1594_p10, %p1590_p4 }
 0x213   : > { %1598 = shalt.err (!%p1595_p8)
}
 0x214   : > { %1411 = dma.vmem_to_hbm [thread:$0]  (%p1787_p9), %s1213_s8, 128, %s1210_s16, %s1192_s22   ;;  %v1181_v59 = vld [vmem:[#allocation2] sm:$0x1] }
 0x215   : > { %s1401_s9 = sshll.u32 %s1679_s26, 4  ;;  %s340_s16 = scalar_lea.vmem [#allocation12], %s1843_s14 }
 0x216   : > { %s1225_s8 = sshll.u32 %s340_s16, 4  ;;  %s1223_s10 = scalar_lea.hbm %s1993_s6, %s1401_s9  ;;  %s1226_s8 = int_to_ptr.vmem [resolvable:$true] %s1225_s8 }
 0x217   : > { %s1197_s4 = scalar_lea.sflag [#allocation13], %s1843_s14  ;;  %s1599_s29 = scalar_lea.vmem %s1226_s8, 16 }
 0x218   : > { %p1600_p11 = scmp.ne.s32.totalorder %s1226_s8, %s1599_s29  ;;  %s1697_s17 = smov [#allocation12]  }
 0x219   : > { %s1603_s18 = sshll.u32 %s1697_s17, 4  ;;  %s1604_s18 = int_to_ptr.vmem [resolvable:$false] %s1603_s18 }
 0x21a   : > { %p1601_p12 = pnand %p1600_p11, %p1787_p9  ;;  %s1605_s26 = scalar_lea.vmem %s1604_s18, 32 }
 0x21b   : > { %p1606_p1 = scmp.lt.s32.totalorder %s1226_s8, %s1604_s18  ;;  %p1607_p13 = scmp.lt.s32.totalorder %s1605_s26, %s1599_s29 }
 0x21c   : > { %p1602_p0 = pneg %p1601_p12 }
 0x21d   : > { %p1608_p2 = por %p1607_p13, %p1606_p1 }
 0x21f   : > { %p1609_p3 = pnand %p1608_p2, %p1602_p0 }
 0x2bf   : > { %v1055_v18 = vpop.f32.mrf.mxu0 }
 0x2c0   : > { %v1095_v19 = vpop.f32.mrf.mxu1 }
 0x2c1   : > { %v1057_v22 = vpop.f32.mrf.mxu0  ;;  %v1096_v54 = vadd.f32 %v1095_v19, %v1055_v18 }
 0x2c2   : > { %v1097_v52 = vpop.f32.mrf.mxu1 }
 0x2c3   : > { %v1058_v13 = vpop.f32.mrf.mxu0 }
 0x2c4   : > { %v1098_v14 = vpop.f32.mrf.mxu1 }
 0x2c5   : > { %v1059_v53 = vpop.f32.mrf.mxu0 }
 0x2c6   : > { %v1099_v55 = vpop.f32.mrf.mxu1 }
 0x2c7   : > { %v1135_v56 = vpop.f32.mrf.mxu0 }
 0x2c8   : > { %v1136_v57 = vadd.f32 %v1135_v56, %v1096_v54  ;;  %v1175_v58 = vpop.f32.mrf.mxu1 }
 0x2c9   : > { %v1137_v60 = vpop.f32.mrf.mxu0 }
 0x2ca   : > { %v1176_v61 = vadd.f32 %v1175_v58, %v1136_v57  ;;  %v1177_v62 = vpop.f32.mrf.mxu1 }
 0x2cb   : > { %v1138_v63 = vpop.f32.mrf.mxu0 }
 0x2cc   : > { %v1182_v0 = vadd.f32 %v1181_v59, %v1176_v61  ;;  %v1178_v1 = vpop.f32.mrf.mxu1 }
 0x2cd   : > { %v1139_v2 = vpop.f32.mrf.mxu0 }
 0x2ce   : > { %1184 = vst.msk [vmem:[#allocation2] sm:$0x1] %vm349_vm3, %v1182_v0  ;;  %v1179_v3 = vpop.f32.mrf.mxu1 }
 0x2d5   : > { %v1188_v7 = vld [vmem:[#allocation2] sm:$0x1] }
 0x2d6   : > { %v1189_v9 = vmul.f32 0.0009765625, %v1188_v7 }
 0x2d8   : > { %1190 = vst.msk [vmem:[%s340_s16] sm:$0x1] %vm349_vm3, %v1189_v9 }
 0x2d9   : > { %1612 = shalt.err (!%p1609_p3)
}
 0x2da   : > { %s1613_s20 = scalar_lea.hbm %s1223_s10, 16  ;;  %s1617_s15 = scalar_lea.hbm %s1993_s6, 32 }
 0x2db   : > { %p1614_p5 = scmp.ne.s32.totalorder %s1223_s10, %s1613_s20  ;;  %p1618_p7 = scmp.lt.s32.totalorder %s1223_s10, %s1993_s6 }
 0x2dc   : > { %p1619_p10 = scmp.lt.s32.totalorder %s1617_s15, %s1613_s20 }
 0x2dd   : > { %p1615_p4 = pnand %p1614_p5, %p1787_p9 }
 0x2de   : > { %p1620_p8 = por %p1619_p10, %p1618_p7 }
 0x2df   : > { %p1616_p6 = pneg %p1615_p4 }
 0x2e1   : > { %p1621_p11 = pnand %p1620_p8, %p1616_p6 }
 0x2e3   : > { %1624 = shalt.err (!%p1621_p11)
}
 0x2e4   : > { %1412 = dma.vmem_to_hbm [thread:$0]  (%p1787_p9), %s1226_s8, 16, %s1223_s10, %s1197_s4  }
 0x2e5 PF: > { %s1237_s16 = sand.u32 1, %s1667_s23   ;;  %p2000_p12 = scmp.ne.s32.totalorder %s1997_s13, 0 }
 0x2e6   : > { %p2001_p0 = scmp.ge.s32.totalorder %s1687_s28, 2  ;;  %s1238_s22 = scalar_lea.sflag [#allocation8], %s1237_s16 }
 0x2e8   : > { %p1423_p1 = pnand %p2001_p0, %p2000_p12 }
 0x2ea   : > { %p1424_p13 = pneg %p1423_p1 }
 0x2ec   : > { %1658 = dma.done.wait (%p1424_p13), %s1238_s22, 128  }
 0x2ed   : > { %1660 = vsyncadd (%p1424_p13), %s1238_s22, 4294967168  ;;  %s1247_s7 = scalar_lea.sflag [#allocation13], %s1237_s16 }
 0x2ee   : > { %1662 = dma.done.wait (%p1424_p13), %s1247_s7, 16  }
 0x2ef   : > { %1664 = vsyncadd (%p1424_p13), %s1247_s7, 4294967280  ;;  %s30_s28 = sadd.s32 1, %s1687_s28   ;;  %s2002_s23 = smov %s1671_s24 }
 0x2f0   : > { %p27_p2 = scmp.ge.s32.totalorder %s30_s28, 4   ;;  %s2003_s24 = smov %s1675_s25 }
 0x2f1   : > { %s2004_s25 = smov %s1792_s12  ;;  %s2005_s26 = smov %s1683_s27 }
 0x2f2   : > { %s2006_s27 = smov %s2008_s30  ;;  %29 = sbr.rel (!%p27_p2) target bundleno = 12 (0xc), region = 123 }
 0x2f7   :  { %1251 = vsyncpa [#allocation7], 1 }
 0x2f8   :  { %1253 = vsyncpa [#allocation7 + $0x1], 1 }
 0x2f9   :  { %1254 = vsyncpa [#allocation10], 1 }
 0x2fa   :  { %1256 = vsyncpa [#allocation10 + $0x1], 1 }
 0x2fb   :  { %1257 = vsyncpa [#allocation8], 1 }
 0x2fc   :  { %1259 = vsyncpa [#allocation8 + $0x1], 1 }
 0x2fd   :  { %1260 = vsyncpa [#allocation13], 1 }
 0x2fe   :  { %1262 = vsyncpa [#allocation13 + $0x1], 1 }

</bundles_post_ra>
